<compile_context>
chip_gen: v7x
topology: tpu7x:2x2x1
jax: 0.10.0
libtpu: 0.0.40
codegen_flags: <defaults>
</compile_context>

<pallas_src>
import jax
import jax.numpy as jnp
from jax import lax
from jax.experimental import pallas as pl
from jax.experimental.pallas import tpu as pltpu


# Whole-array-resident specs: no grid, block == full array.
_VMEM = pl.BlockSpec(memory_space=pltpu.MemorySpace.VMEM)
_SMEM = pl.BlockSpec(memory_space=pltpu.MemorySpace.SMEM)


# ---------------------------------------------------------------------------
# Shared fc1 -> ReLU -> fc2 body
# ---------------------------------------------------------------------------
def _forward_body(x_ref, w1_ref, b1_ref, w2_ref, b2_ref):
    x = x_ref[...]                                                    # (B, d_in)
    h = jnp.dot(x, w1_ref[...], preferred_element_type=jnp.float32)  # (B, H)  MXU
    h = jnp.maximum(h + b1_ref[...], 0.0)                            # bias + ReLU (VPU)

    w2 = w2_ref[...]                                                  # (d_out, H)
    d_out = w2.shape[0]
    if d_out == 1:
        # VPU multiply + XLU lane-reduce: cheaper than pushing a 1-wide column
        # through the MXU result FIFO, and lands in otherwise idle VLIW slots.
        y = jnp.sum(h * w2, axis=-1, keepdims=True)                   # (B, 1)
        y = y + b2_ref[0]                                             # scalar bias (SMEM)
    else:
        # General path: contract over H without materializing a transpose.
        y = lax.dot_general(h, w2, (((1,), (1,)), ((), ())),
                            preferred_element_type=jnp.float32)       # (B, d_out)
        bias = jnp.stack([b2_ref[i] for i in range(d_out)])           # (d_out,)
        y = y + bias[None, :]
    return y


# ---------------------------------------------------------------------------
# Pallas kernels
# ---------------------------------------------------------------------------
def _mlp_loss_kernel(x_ref, w1_ref, b1_ref, w2_ref, b2_ref, labels_ref,
                     out_ref, loss_ref):
    """fc1 -> ReLU -> fc2 -> MSE loss, fused in one kernel invocation."""
    y = _forward_body(x_ref, w1_ref, b1_ref, w2_ref, b2_ref)
    out_ref[...] = y

    # MSE over the logical (B, d_out) shape (padding lanes never enter the
    # reduction). Scalar written to a 1-D SMEM output.
    diff = y - labels_ref[...]
    denom = float(diff.shape[0] * diff.shape[1])
    loss_ref[0] = jnp.sum(diff * diff) / denom


def _mlp_kernel(x_ref, w1_ref, b1_ref, w2_ref, b2_ref, out_ref):
    """fc1 -> ReLU -> fc2 (no loss)."""
    out_ref[...] = _forward_body(x_ref, w1_ref, b1_ref, w2_ref, b2_ref)


# ---------------------------------------------------------------------------
# Cost estimate (advisory scheduling hint; kernel is overhead-bound)
# ---------------------------------------------------------------------------
def _cost_estimate(B, d_in, H, d_out, with_labels):
    flops = (2 * B * d_in * H          # fc1 matmul
             + 2 * B * H * d_out       # fc2 contraction
             + 2 * B * H               # bias + relu
             + B * d_out)              # bias2
    bytes_accessed = 4 * (B * d_in + d_in * H + H + H * d_out + d_out
                          + B * d_out)
    if with_labels:
        flops += 3 * B * d_out + 1     # diff, square, sum, divide
        bytes_accessed += 4 * (B * d_out + 1)
    return pl.CostEstimate(flops=flops, transcendentals=0,
                           bytes_accessed=bytes_accessed)


# ---------------------------------------------------------------------------
# Wrapper (mirrors CustomModel.forward)
# ---------------------------------------------------------------------------
def custom_model_forward(params, inputs, labels=None):
    """Returns {'loss': loss_or_None, 'outputs': y}, matching the PyTorch module."""
    w1, b1, w2, b2 = params["w1"], params["b1"], params["w2"], params["b2"]
    B, d_in = inputs.shape
    hidden = w1.shape[1]
    d_out = w2.shape[0]

    if labels is None:
        y = pl.pallas_call(
            _mlp_kernel,
            out_shape=jax.ShapeDtypeStruct((B, d_out), jnp.float32),
            in_specs=[_VMEM, _VMEM, _VMEM, _VMEM, _SMEM],
            out_specs=_VMEM,
            cost_estimate=_cost_estimate(B, d_in, hidden, d_out, False),
        )(inputs, w1, b1, w2, b2)
        return {"loss": None, "outputs": y}

    y, loss = pl.pallas_call(
        _mlp_loss_kernel,
        out_shape=(
            jax.ShapeDtypeStruct((B, d_out), jnp.float32),
            jax.ShapeDtypeStruct((1,), jnp.float32),
        ),
        in_specs=[_VMEM, _VMEM, _VMEM, _VMEM, _SMEM, _VMEM],
        out_specs=(_VMEM, _SMEM),
        cost_estimate=_cost_estimate(B, d_in, hidden, d_out, True),
    )(inputs, w1, b1, w2, b2, labels)
    return {"loss": loss[0], "outputs": y}


# ---------------------------------------------------------------------------
# Deterministic parameter init (PyTorch nn.Linear-style uniform(-1/sqrt(fan_in), ..))
# ---------------------------------------------------------------------------
def init_params(key, input_dim=10, hidden_dim=50, output_dim=1):
    k1, k2, k3, k4 = jax.random.split(key, 4)
    bnd1 = 1.0 / jnp.sqrt(input_dim)
    bnd2 = 1.0 / jnp.sqrt(hidden_dim)
    return {
        # fc1 stored pre-transposed: (in_features, out_features) -> x @ w1 on the MXU
        "w1": jax.random.uniform(k1, (input_dim, hidden_dim), jnp.float32, -bnd1, bnd1),
        "b1": jax.random.uniform(k2, (1, hidden_dim), jnp.float32, -bnd1, bnd1),
        # fc2 stored in PyTorch-native layout: (out_features, in_features)
        "w2": jax.random.uniform(k3, (output_dim, hidden_dim), jnp.float32, -bnd2, bnd2),
        # fc2 bias as a flat vector -> SMEM scalar input
        "b2": jax.random.uniform(k4, (output_dim,), jnp.float32, -bnd2, bnd2),
    }


if __name__ == "__main__":
    key = jax.random.PRNGKey(0)
    k_params, k_x, k_lbl = jax.random.split(key, 3)

    input_dim, hidden_dim, output_dim = 10, 50, 1
    batch = 8

    params = init_params(k_params, input_dim, hidden_dim, output_dim)
    x = jax.random.normal(k_x, (batch, input_dim), jnp.float32)
    labels = jax.random.normal(k_lbl, (batch, output_dim), jnp.float32)

    # Path with labels (loss computed in-kernel, written to SMEM)
    out = custom_model_forward(params, x, labels)
    jax.block_until_ready(out["outputs"])
    jax.block_until_ready(out["loss"])

    # Path without labels (loss is None, like the PyTorch module)
    out_nl = custom_model_forward(params, x, None)
    jax.block_until_ready(out_nl["outputs"])
    assert out_nl["loss"] is None

    # The two compiled paths must agree on the forward output
    assert jnp.allclose(out["outputs"], out_nl["outputs"], atol=1e-6, rtol=1e-6)

    # Cross-check against plain JAX reference
    h_ref = jnp.maximum(x @ params["w1"] + params["b1"], 0.0)
    y_ref = h_ref @ params["w2"].T + params["b2"]
    loss_ref = jnp.mean((y_ref - labels) ** 2)
    assert jnp.allclose(out["outputs"], y_ref, atol=1e-5, rtol=1e-5)
    assert jnp.allclose(out["loss"], loss_ref, atol=1e-5, rtol=1e-5)

    print("KERNEL_OK")
</pallas_src>

<mosaic_0001>
module attributes {stable_mosaic.version = 11 : i64} {
  func.func @_mlp_loss_kernel(%arg0: memref<8x10xf32, #tpu.memory_space<vmem>>, %arg1: memref<10x50xf32, #tpu.memory_space<vmem>>, %arg2: memref<1x50xf32, #tpu.memory_space<vmem>>, %arg3: memref<1x50xf32, #tpu.memory_space<vmem>>, %arg4: memref<1xf32, #tpu.memory_space<smem>>, %arg5: memref<8x1xf32, #tpu.memory_space<vmem>>, %arg6: memref<8x1xf32, #tpu.memory_space<vmem>>, %arg7: memref<1xf32, #tpu.memory_space<smem>>) attributes {dimension_semantics = [], scalar_prefetch = 0 : i64, scratch_operands = 0 : i64, tpu.core_type = #tpu.core_type<tc>} {
    %c0 = arith.constant 0 : index
    %c0_0 = arith.constant 0 : index
    %0 = vector.load %arg0[%c0, %c0_0] : memref<8x10xf32, #tpu.memory_space<vmem>>, vector<8x10xf32>
    %c0_1 = arith.constant 0 : index
    %c0_2 = arith.constant 0 : index
    %1 = vector.load %arg1[%c0_1, %c0_2] : memref<10x50xf32, #tpu.memory_space<vmem>>, vector<10x50xf32>
    %cst = arith.constant dense<0.000000e+00> : vector<8x50xf32>
    %2 = tpu.matmul %0, %1, %cst {dimension_numbers = #tpu.dot_dimension_numbers<[1], [0], [0], [1], [0, 0, 1, 1], [], []>} : vector<8x10xf32>, vector<10x50xf32>, vector<8x50xf32> -> vector<8x50xf32>
    %c0_3 = arith.constant 0 : index
    %c0_4 = arith.constant 0 : index
    %3 = vector.load %arg2[%c0_3, %c0_4] : memref<1x50xf32, #tpu.memory_space<vmem>>, vector<1x50xf32>
    %4 = vector.broadcast %3 : vector<1x50xf32> to vector<8x50xf32>
    %5 = arith.addf %2, %4 : vector<8x50xf32>
    %cst_5 = arith.constant 0.000000e+00 : f32
    %6 = vector.broadcast %cst_5 : f32 to vector<8x50xf32>
    %7 = arith.maximumf %5, %6 : vector<8x50xf32>
    %c0_6 = arith.constant 0 : index
    %c0_7 = arith.constant 0 : index
    %8 = vector.load %arg3[%c0_6, %c0_7] : memref<1x50xf32, #tpu.memory_space<vmem>>, vector<1x50xf32>
    %9 = vector.broadcast %8 : vector<1x50xf32> to vector<8x50xf32>
    %10 = arith.mulf %7, %9 : vector<8x50xf32>
    %cst_8 = arith.constant dense<0.000000e+00> : vector<8xf32>
    %11 = vector.multi_reduction <add>, %10, %cst_8 [1] : vector<8x50xf32> to vector<8xf32>
    %12 = vector.shape_cast %11 : vector<8xf32> to vector<8x1xf32>
    %c0_9 = arith.constant 0 : index
    %13 = memref.load %arg4[%c0_9] : memref<1xf32, #tpu.memory_space<smem>>
    %14 = vector.broadcast %13 : f32 to vector<8x1xf32>
    %15 = arith.addf %12, %14 : vector<8x1xf32>
    %c0_10 = arith.constant 0 : index
    %c0_11 = arith.constant 0 : index
    %16 = vector.load %arg6[%c0_10, %c0_11] : memref<8x1xf32, #tpu.memory_space<vmem>>, vector<8x1xf32>
    tpu.vector_store %arg6[%c0_10, %c0_11], %15 {strides = array<i32>} : memref<8x1xf32, #tpu.memory_space<vmem>>, vector<8x1xf32>,
    %c0_12 = arith.constant 0 : index
    %c0_13 = arith.constant 0 : index
    %17 = vector.load %arg5[%c0_12, %c0_13] : memref<8x1xf32, #tpu.memory_space<vmem>>, vector<8x1xf32>
    %18 = arith.subf %15, %17 : vector<8x1xf32>
    %19 = arith.mulf %18, %18 : vector<8x1xf32>
    %20 = vector.shape_cast %19 : vector<8x1xf32> to vector<1x8x1xf32>
    %cst_14 = arith.constant dense<0.000000e+00> : vector<1xf32>
    %21 = vector.multi_reduction <add>, %20, %cst_14 [1, 2] : vector<1x8x1xf32> to vector<1xf32>
    %22 = vector.shape_cast %21 : vector<1xf32> to vector<1x1x1xf32>
    %23 = vector.extract %22[0, 0, 0] : f32 from vector<1x1x1xf32>
    %cst_15 = arith.constant 8.000000e+00 : f32
    %24 = arith.divf %23, %cst_15 : f32
    %c0_16 = arith.constant 0 : index
    %25 = memref.load %arg7[%c0_16] : memref<1xf32, #tpu.memory_space<smem>>
    memref.store %24, %arg7[%c0_16] : memref<1xf32, #tpu.memory_space<smem>>
    return
  }
}

</mosaic_0001>

<bundles_post_ra>
// kernel: tpu_custom_call.1
= control target key start
LH: loop header
LB: loop body
LE: loop exit
PB: predicated region body
PF: predicated region fallthrough
CT: control target
= control target key end

     0   :  { %14 = vsyncpa [#allocation4], 0  ;;  %s334_s0 = inlined_call_operand.hbm [shape: f32[8,10], index: 0, kind: input, shape index: {}]   ;;  %s335_s1 = inlined_call_operand.vmem [shape: f32[10,50], index: 1, kind: input, shape index: {}]   ;;  %s336_s2 = inlined_call_operand.vmem [shape: f32[1,50], index: 2, kind: input, shape index: {}]   ;;  %s337_s3 = inlined_call_operand.vmem [shape: f32[1,50], index: 3, kind: input, shape index: {}]   ;;  %s338_s4 = inlined_call_operand.<no memory space> [shape: f32[1], index: 4, kind: input, shape index: {}]   ;;  %s339_s5 = inlined_call_operand.vmem [shape: f32[8,1], index: 5, kind: input, shape index: {}]   ;;  %s340_s6 = inlined_call_operand.vmem [shape: f32[8,1], index: 6, kind: output, shape index: {0}]   ;;  %s341_s7 = inlined_call_operand.hbm [shape: f32[1], index: 7, kind: output, shape index: {1}]  }
   0x1   :  { %15 = vsyncpa [#allocation5], 0  ;;  %s243_s24 = smov [#allocation3]   ;;  %s207_s28 = scalar_lea.hbm %s334_s0, 128 }
   0x2   :  { %s22_s25 = sshll.u32 %s243_s24, 4  ;;  %p208_p0 = scmp.ne.s32.totalorder %s334_s0, %s207_s28  ;;  %s23_s25 = int_to_ptr.vmem [resolvable:$true] %s22_s25 }
   0x3   :  { %p211_p1 = scmp.lt.u32.totalorder %s207_s28, %s334_s0 }
   0x5   :  { %p213_p2 = pnand %p211_p1, %p208_p0 }
   0x7   :  { %216 = shalt.err (!%p213_p2)
}
   0x8   :  { %s217_s10 = scalar_lea.vmem %s23_s25, 128  ;;  %p222_p4 = scmp.lt.s32.totalorder %s23_s25, %s23_s25 }
   0x9   :  { %p218_p3 = scmp.ne.s32.totalorder %s23_s25, %s217_s10  ;;  %p223_p5 = scmp.lt.s32.totalorder %s217_s10, %s217_s10 }
   0xb   :  { %p224_p6 = por %p223_p5, %p222_p4 }
   0xd   :  { %p225_p7 = pnand %p224_p6, %p218_p3 }
   0xf   :  { %228 = shalt.err (!%p225_p7)
}
  0x10   :  { %25 = dma.hbm_to_vmem [thread:$0]  %s334_s0, 128, %s23_s25, [#allocation4]  }
  0x11   :  { %239 = dma.done.wait [#allocation4], 128  }
  0x12   :  { %240 = vsyncadd [#allocation4], 4294967168  ;;  %v244_v0 = vmov 0.0|0.0   ;;  %vm245_vm0 = vmmov 0   ;;  %v246_v1 = vmov 0.0   ;;  %vm53_vm1 = vcmask 1041408  }
  0x13   :  { %195 = vmatprep.subr.bf16.mxu0 %v244_v0  ;;  %192 = vmatprep.mubr.msk.f32.mxu0 %vm245_vm0, %v246_v1  ;;  %v40_v2 = vld [vmem:[%s335_s1] sm:$0xff]  ;;  %v41_v3 = vld [vmem:[%s335_s1 + $0x8] sm:$0x3]  ;;  %vm247_vm2 = vmmov 1   ;;  %vm49_vm4 = vcmask 80896   ;;  %vm136_vm5 = vcmask 408576   ;;  %v141_v14 = vstv %s338_s4 }
  0x14   :  { %vm197_vm3 = vmpackc.low %vm53_vm1, %vm247_vm2  ;;  %v196_v4 = vpack.c.bf16 %v41_v3, %v40_v2  ;;  %v39_v5 = vld [vmem:[#allocation3] sm:$0xff]  ;;  %vm143_vm6 = vcmask 7168   ;;  %s229_s25 = scalar_lea.hbm %s341_s7, 16 }
  0x15   :  { %v181_v6 = vld [vmem:[%s336_s2] ss:$0 sm:$0xff]  ;;  %p230_p8 = scmp.ne.s32.totalorder %s341_s7, %s229_s25  ;;  %p233_p9 = scmp.lt.u32.totalorder %s229_s25, %s341_s7 }
  0x16   :  { %198 = vmatpush3.bf16.msk.msra.mxu0 %vm197_vm3, %v196_v4  ;;  %v184_v10 = vld [vmem:[%s337_s3] ss:$0 sm:$0xff] }
  0x17   :  { %v145_v15 = vld [vmem:[%s339_s5] sm:$0xff]  ;;  %p235_p10 = pnand %p233_p9, %p230_p8 }
  0x19   :  { %193 = vmatmul.mubr.msk.f32.vlgmr.msra.gmra.mrb[0].mxu0 %vm49_vm4, %v39_v5 }
  0xec   :  { %v123_v7 = vpop.f32.mrb[0].mxu0 }
  0xed   :  { %v124_v8 = vadd.f32 %v181_v6, %v123_v7  ;;  %v194_v9 = vpop.f32.mrb[1].mxu0 }
  0xef   :  { %v127_v11 = vmax.f32 %v124_v8, 0.0 }
  0xf1   :  { %v135_v12 = vmul.f32 %v184_v10, %v127_v11 }
  0xf3   :  { %v137_v13 = vsel %vm136_vm5, %v135_v12, 0.0 }
  0xf4   :  { %138 = vadd.xlane.f32.xlu0 %v137_v13 }
 0x181   :  { %v139_v16 = vpop.xlane.xlu0 %138 }
 0x182   :  { %v142_v17 = vadd.f32 %v141_v14, %v139_v16 }
 0x184   :  { %v146_v18 = vsub.f32 %v142_v17, %v145_v15  ;;  %144 = vst.msk [vmem:[%s340_s6] sm:$0xff] %vm143_vm6, %v142_v17 }
 0x186   :  { %v147_v19 = vmul.f32 %v146_v18, %v146_v18 }
 0x188   :  { %v148_v20 = vsel %vm143_vm6, %v147_v19, 0.0 }
 0x189   :  { %149 = vadd.xlane.f32.xlu0 %v148_v20 }
 0x216   :  { %v150_v21 = vpop.xlane.xlu0 %149 }
 0x217   :  { %v151_v22 = vrot.slane %v150_v21, 4 }
 0x219   :  { %v152_v23 = vadd.f32 %v151_v22, %v150_v21 }
 0x21b   :  { %v153_v24 = vrot.slane %v152_v23, 2 }
 0x21d   :  { %v154_v25 = vadd.f32 %v153_v24, %v152_v23 }
 0x21f   :  { %v155_v26 = vrot.slane %v154_v25, 1 }
 0x221   :  { %v156_v27 = vadd.f32 %v155_v26, %v154_v25 }
 0x223   :  { %199 = vpush %v156_v27 }
 0x254   :  { %s200_s3 = spop %199 }
 0x255   :  { %s160_s4 = smul.f32 0.125, %s200_s3 }
 0x257   :  { %162 = sst [smem:[#allocation6]] %s160_s4 }
 0x258   :  { %238 = shalt.err (!%p235_p10)
}
 0x259   :  { %s248_s29 = smov [#allocation6]  }
 0x25a   :  { %172 = dma.smem_to_hbm %s248_s29, 16, %s341_s7, [#allocation5]  }
 0x25b   :  { %241 = dma.done.wait [#allocation5], 16  }
 0x25c   :  { %242 = vsyncadd [#allocation5], 4294967280 }
 0x25d   :  { %178 = sfence }
 0x25e   :  { %179 = vsyncpa [#allocation4], 1 }
 0x25f   :  { %180 = vsyncpa [#allocation5], 1 }

</bundles_post_ra>
